<compile_context>
chip_gen: v5e
topology: v5e:2x2
jax: 0.10.0
libtpu: 0.0.40
codegen_flags: <defaults>
</compile_context>

<pallas_src>
import functools

import jax
import jax.numpy as jnp
from jax.experimental import pallas as pl
from jax.experimental.pallas import tpu as pltpu

_EPS = 1e-07
_LANE = 128
_SUBLANE = 8
# ~2 MiB f32 per input block.  v5e/v6e (128 MiB VMEM) could go larger for a
# ~1% gain; this value is also safe on v7x (64 MiB VMEM).
_DEFAULT_BLOCK_ELEMS = 512 * 1024


def _cdiv(a, b):
    return -(-a // b)


def _num_tensorcores():
    """Best-effort TensorCore count (2 on v7x, 1 on v5e/v6e)."""
    try:
        info = pltpu.get_tpu_info()
        for name in ("num_cores", "core_count", "num_tensorcores",
                     "tensorcore_count"):
            v = getattr(info, name, None)
            if isinstance(v, int) and v >= 1:
                return v
    except Exception:
        pass
    try:
        kind = jax.devices()[0].device_kind.lower()
        if "v7" in kind:
            return 2
    except Exception:
        pass
    return 1


def _bce_sum_kernel(x_ref, t_ref, out_ref, acc_ref, *, valid_rows, tile_rows,
                    width, tiles_per_chunk, has_partial_tile):
    ci = pl.program_id(0)
    ti = pl.program_id(1)

    @pl.when(ti == 0)
    def _init():
        acc_ref[...] = jnp.zeros_like(acc_ref)

    p = jnp.clip(x_ref[...].astype(jnp.float32), _EPS, 1.0 - _EPS)
    t = t_ref[...].astype(jnp.float32)
    loss = -(t * jnp.log(p) + (1.0 - t) * jnp.log(1.0 - p))

    def _fold(v):
        # (tile_rows, width) -> (8, width) via a leading-axis sum: pure VPU
        # vreg adds (no XLU), keeps the VMEM accumulator tiny.
        if tile_rows > _SUBLANE and tile_rows % _SUBLANE == 0:
            return v.reshape(tile_rows // _SUBLANE, _SUBLANE, width).sum(axis=0)
        return v

    if has_partial_tile:
        row0 = (ci * tiles_per_chunk + ti) * tile_rows
        tile_is_full = row0 + tile_rows <= valid_rows

        @pl.when(tile_is_full)
        def _full():
            acc_ref[...] += _fold(loss)

        @pl.when(jnp.logical_not(tile_is_full))
        def _masked():
            # Only whole out-of-bounds rows can occur here (the ragged < width
            # tail is handled in the wrapper), so a row-index compare suffices.
            row_ids = jax.lax.broadcasted_iota(jnp.int32, (tile_rows, width), 0)
            valid = (row0 + row_ids) < valid_rows
            acc_ref[...] += _fold(jnp.where(valid, loss, 0.0))
    else:
        acc_ref[...] += _fold(loss)

    @pl.when(ti == tiles_per_chunk - 1)
    def _finalize():
        s = jnp.sum(acc_ref[...])  # single small cross-lane reduce per chunk
        out_ref[...] = jnp.full(out_ref.shape, s, dtype=out_ref.dtype)


def _bce_sum_pallas(x2, t2, block_elems, num_chunks_req):
    """Sum of elementwise BCE over a lane-dense (rows, width) slab."""
    rows, width = x2.shape
    max_tile_rows = max(_SUBLANE, (block_elems // width) // _SUBLANE * _SUBLANE)
    tile_rows = rows if rows <= max_tile_rows else max_tile_rows
    total_tiles = _cdiv(rows, tile_rows)

    num_chunks = 1
    if num_chunks_req is not None:
        if num_chunks_req > 1 and total_tiles % num_chunks_req == 0:
            num_chunks = num_chunks_req
    else:
        cores = _num_tensorcores()
        if cores > 1 and total_tiles % cores == 0 and total_tiles >= 2 * cores:
            num_chunks = cores
    tiles_per_chunk = total_tiles // num_chunks
    grid_rows = num_chunks * tiles_per_chunk * tile_rows
    has_partial_tile = grid_rows > rows
    acc_rows = _SUBLANE if tile_rows % _SUBLANE == 0 else tile_rows

    kernel = functools.partial(
        _bce_sum_kernel, valid_rows=rows, tile_rows=tile_rows, width=width,
        tiles_per_chunk=tiles_per_chunk, has_partial_tile=has_partial_tile)

    elems = rows * width
    cost = pl.CostEstimate(
        flops=8 * elems,
        transcendentals=2 * elems,
        bytes_accessed=elems * (x2.dtype.itemsize + t2.dtype.itemsize)
        + num_chunks * _SUBLANE * _LANE * 4)

    partials = pl.pallas_call(
        kernel,
        out_shape=jax.ShapeDtypeStruct((num_chunks, _SUBLANE, _LANE),
                                       jnp.float32),
        grid_spec=pltpu.PrefetchScalarGridSpec(
            num_scalar_prefetch=0,
            grid=(num_chunks, tiles_per_chunk),
            in_specs=[
                pl.BlockSpec((tile_rows, width),
                             lambda ci, ti: (ci * tiles_per_chunk + ti, 0)),
                pl.BlockSpec((tile_rows, width),
                             lambda ci, ti: (ci * tiles_per_chunk + ti, 0)),
            ],
            out_specs=pl.BlockSpec((1, _SUBLANE, _LANE),
                                   lambda ci, ti: (ci, 0, 0)),
            scratch_shapes=[pltpu.VMEM((acc_rows, width), jnp.float32)],
        ),
        compiler_params=pltpu.CompilerParams(
            dimension_semantics=("parallel", "arbitrary"),
            vmem_limit_bytes=48 * 1024 * 1024,
        ),
        cost_estimate=cost,
    )(x2, t2)

    return jnp.sum(partials[:, 0, 0])


def multi_label_loss(inputs, target, alpha=None,
                     block_elems=_DEFAULT_BLOCK_ELEMS, num_chunks=None):
    """Pallas equivalent of MultiLabelLoss.forward.

    inputs: (N, C, H, W) probabilities. target: same shape; any float/bf16
    dtype ({0,1} labels in bf16 stream 25% fewer HBM bytes, upcast in-kernel).
    Returns (count_loss_scalar, inputs).
    """
    if inputs.shape != target.shape:
        raise ValueError("inputs and target must have the same shape")
    n_class = inputs.shape[1]
    total = inputs.size
    # Per-class mean denominator N*H*W == total / n_class (class-independent).
    scale = float(n_class) / float(total)

    x_flat = inputs.reshape(-1)   # bitcast view, no copy
    t_flat = target.reshape(-1)

    # Largest lane width (multiple of 128) that divides `total`, so the
    # (rows, width) view is a pure reshape -- no jnp.pad / full-array copy.
    width = 0
    for cand in (8 * _LANE, 4 * _LANE, 2 * _LANE, _LANE):
        if total >= cand and total % cand == 0:
            width = cand
            break

    if width:
        main, rem = total, 0
    else:
        width = _LANE
        main = (total // width) * width
        rem = total - main

    loss_sum = jnp.zeros((), jnp.float32)
    if main:
        if rem == 0:
            x2 = x_flat.reshape(-1, width)
            t2 = t_flat.reshape(-1, width)
        else:
            # Ragged total (rare): the prefix slice below is the only path
            # that still copies the bulk of the data.
            # TODO(synk): manual (pl.ANY) DMA path to avoid the prefix copy.
            x2 = x_flat[:main].reshape(-1, width)
            t2 = t_flat[:main].reshape(-1, width)
        loss_sum = loss_sum + _bce_sum_pallas(x2, t2, block_elems, num_chunks)

    if rem:
        # <128-element tail: plain JAX, same math as the kernel.
        pt = jnp.clip(x_flat[main:].astype(jnp.float32), _EPS, 1.0 - _EPS)
        tt = t_flat[main:].astype(jnp.float32)
        loss_sum = loss_sum - jnp.sum(tt * jnp.log(pt)
                                      + (1.0 - tt) * jnp.log(1.0 - pt))

    count_loss = loss_sum * scale
    if alpha is not None:
        count_loss = count_loss * alpha
    return count_loss, inputs


def _reference_multi_label_loss(inputs, target, alpha=None):
    """Pure-JAX reference matching the PyTorch module exactly."""
    n_class = inputs.shape[1]
    count_loss = jnp.float32(0.0)
    for ci in range(n_class):
        p = jnp.clip(inputs[:, ci].astype(jnp.float32), _EPS, 1.0 - _EPS)
        t = target[:, ci].astype(jnp.float32)
        loss = -(t * jnp.log(p) + (1.0 - t) * jnp.log(1.0 - p))
        count_loss = count_loss + loss.mean()
    if alpha is not None:
        count_loss = count_loss * alpha
    return count_loss, inputs


if __name__ == "__main__":
    key = jax.random.PRNGKey(0)

    # (shape, alpha, block_elems, num_chunks, target_dtype)
    test_cases = [
        ((2, 4, 16, 16), 0.5, _DEFAULT_BLOCK_ELEMS, None, jnp.float32),   # single tile, no pad/mask
        ((2, 4, 40, 64), None, 16 * 1024, None, jnp.float32),             # multi-tile + fold + boundary row-mask
        ((2, 4, 32, 64), 0.25, 8 * 1024, 2, jnp.bfloat16),                # 2-chunk axis + bf16 targets
        ((1, 5, 32, 33), None, _DEFAULT_BLOCK_ELEMS, None, jnp.float32),  # ragged tail path
        ((1, 3, 5, 7), None, _DEFAULT_BLOCK_ELEMS, None, jnp.float32),    # <128 elements (pure-JAX tail)
    ]

    for idx, (shape, alpha, blk, chunks, t_dtype) in enumerate(test_cases):
        k1, k2 = jax.random.split(jax.random.fold_in(key, idx))
        # inputs are probabilities (BCELoss-on-probs semantics)
        inputs = jax.nn.sigmoid(jax.random.normal(k1, shape, dtype=jnp.float32))
        # target is a binary multi-label map
        target = (jax.random.uniform(k2, shape) > 0.5).astype(t_dtype)

        loss, probs = multi_label_loss(inputs, target, alpha=alpha,
                                       block_elems=blk, num_chunks=chunks)
        loss = jax.block_until_ready(loss)
        probs = jax.block_until_ready(probs)

        ref_loss, ref_probs = _reference_multi_label_loss(inputs, target,
                                                          alpha=alpha)
        assert probs.shape == inputs.shape
        assert jnp.allclose(probs, ref_probs)
        assert jnp.allclose(loss, ref_loss, rtol=1e-5, atol=1e-5), (
            shape, float(loss), float(ref_loss))

    print("KERNEL_OK")
</pallas_src>

<mosaic_0001>
module attributes {stable_mosaic.version = 11 : i64} {
  func.func @_bce_sum_kernel(%arg0: i32, %arg1: i32, %arg2: memref<2x1024xf32, #tpu.memory_space<vmem>>, %arg3: memref<2x1024xf32, #tpu.memory_space<vmem>>, %arg4: memref<1x8x128xf32, #tpu.memory_space<vmem>>, %arg5: memref<2x1024xf32, #tpu.memory_space<vmem>>) attributes {dimension_semantics = [#tpu.dimension_semantics<parallel>, #tpu.dimension_semantics<arbitrary>], iteration_bounds = array<i64: 1, 1>, scalar_prefetch = 0 : i64, scratch_operands = 1 : i64, tpu.core_type = #tpu.core_type<tc>, window_params = [{transform_indices = @transform_0, window_bounds = array<i64: 2, 1024>}, {transform_indices = @transform_1, window_bounds = array<i64: 2, 1024>}, {transform_indices = @transform_2, window_bounds = array<i64: 1, 8, 128>}]} {
    %c0_i32 = arith.constant 0 : i32
    %0 = arith.cmpi eq, %arg1, %c0_i32 : i32
    %1 = arith.extui %0 : i1 to i32
    %c0_i32_0 = arith.constant 0 : i32
    %2 = arith.cmpi ne, %1, %c0_i32_0 : i32
    scf.if %2 {
      %cst_14 = arith.constant 0.000000e+00 : f32
      %26 = vector.broadcast %cst_14 : f32 to vector<2x1024xf32>
      %c0_15 = arith.constant 0 : index
      %c0_16 = arith.constant 0 : index
      %27 = vector.load %arg5[%c0_15, %c0_16] : memref<2x1024xf32, #tpu.memory_space<vmem>>, vector<2x1024xf32>
      tpu.vector_store %arg5[%c0_15, %c0_16], %26 {strides = array<i32>} : memref<2x1024xf32, #tpu.memory_space<vmem>>, vector<2x1024xf32>,
    } else {
    }
    %c0 = arith.constant 0 : index
    %c0_1 = arith.constant 0 : index
    %3 = vector.load %arg2[%c0, %c0_1] : memref<2x1024xf32, #tpu.memory_space<vmem>>, vector<2x1024xf32>
    %cst = arith.constant 1.000000e-07 : f32
    %cst_2 = arith.constant 0.99999988 : f32
    %4 = vector.broadcast %cst : f32 to vector<2x1024xf32>
    %5 = arith.maximumf %4, %3 : vector<2x1024xf32>
    %6 = vector.broadcast %cst_2 : f32 to vector<2x1024xf32>
    %7 = arith.minimumf %6, %5 : vector<2x1024xf32>
    %c0_3 = arith.constant 0 : index
    %c0_4 = arith.constant 0 : index
    %8 = vector.load %arg3[%c0_3, %c0_4] : memref<2x1024xf32, #tpu.memory_space<vmem>>, vector<2x1024xf32>
    %9 = math.log %7 : vector<2x1024xf32>
    %10 = arith.mulf %8, %9 : vector<2x1024xf32>
    %cst_5 = arith.constant 1.000000e+00 : f32
    %11 = vector.broadcast %cst_5 : f32 to vector<2x1024xf32>
    %12 = arith.subf %11, %8 : vector<2x1024xf32>
    %cst_6 = arith.constant 1.000000e+00 : f32
    %13 = vector.broadcast %cst_6 : f32 to vector<2x1024xf32>
    %14 = arith.subf %13, %7 : vector<2x1024xf32>
    %15 = math.log %14 : vector<2x1024xf32>
    %16 = arith.mulf %12, %15 : vector<2x1024xf32>
    %17 = arith.addf %10, %16 : vector<2x1024xf32>
    %cst_7 = arith.constant 0.000000e+00 : f32
    %18 = vector.broadcast %cst_7 : f32 to vector<2x1024xf32>
    %19 = arith.subf %18, %17 : vector<2x1024xf32>
    %c0_8 = arith.constant 0 : index
    %c0_9 = arith.constant 0 : index
    %20 = vector.load %arg5[%c0_8, %c0_9] : memref<2x1024xf32, #tpu.memory_space<vmem>>, vector<2x1024xf32>
    %21 = arith.addf %20, %19 : vector<2x1024xf32>
    %c0_10 = arith.constant 0 : index
    %c0_11 = arith.constant 0 : index
    %22 = vector.load %arg5[%c0_10, %c0_11] : memref<2x1024xf32, #tpu.memory_space<vmem>>, vector<2x1024xf32>
    tpu.vector_store %arg5[%c0_10, %c0_11], %21 {strides = array<i32>} : memref<2x1024xf32, #tpu.memory_space<vmem>>, vector<2x1024xf32>,
    %c0_i32_12 = arith.constant 0 : i32
    %23 = arith.cmpi eq, %arg1, %c0_i32_12 : i32
    %24 = arith.extui %23 : i1 to i32
    %c0_i32_13 = arith.constant 0 : i32
    %25 = arith.cmpi ne, %24, %c0_i32_13 : i32
    scf.if %25 {
      %c0_14 = arith.constant 0 : index
      %c0_15 = arith.constant 0 : index
      %26 = vector.load %arg5[%c0_14, %c0_15] : memref<2x1024xf32, #tpu.memory_space<vmem>>, vector<2x1024xf32>
      %27 = vector.shape_cast %26 : vector<2x1024xf32> to vector<1x2x1024xf32>
      %cst_16 = arith.constant dense<0.000000e+00> : vector<1xf32>
      %28 = vector.multi_reduction <add>, %27, %cst_16 [1, 2] : vector<1x2x1024xf32> to vector<1xf32>
      %29 = vector.shape_cast %28 : vector<1xf32> to vector<1x1x1xf32>
      %30 = vector.extract %29[0, 0, 0] : f32 from vector<1x1x1xf32>
      %31 = vector.broadcast %30 : f32 to vector<1x8x128xf32>
      %c0_17 = arith.constant 0 : index
      %c0_18 = arith.constant 0 : index
      %c0_19 = arith.constant 0 : index
      %32 = vector.load %arg4[%c0_17, %c0_18, %c0_19] : memref<1x8x128xf32, #tpu.memory_space<vmem>>, vector<1x8x128xf32>
      tpu.vector_store %arg4[%c0_17, %c0_18, %c0_19], %31 {strides = array<i32>} : memref<1x8x128xf32, #tpu.memory_space<vmem>>, vector<1x8x128xf32>,
    } else {
    }
    return
  }
  func.func @transform_0(%arg0: i32, %arg1: i32) -> (i32, i32) {
    %c1_i32 = arith.constant 1 : i32
    %0 = arith.muli %arg0, %c1_i32 : i32
    %1 = arith.addi %0, %arg1 : i32
    %c0_i32 = arith.constant 0 : i32
    %c0_i32_0 = arith.constant 0 : i32
    return %1, %c0_i32 : i32, i32
  }
  func.func @transform_1(%arg0: i32, %arg1: i32) -> (i32, i32) {
    %c1_i32 = arith.constant 1 : i32
    %0 = arith.muli %arg0, %c1_i32 : i32
    %1 = arith.addi %0, %arg1 : i32
    %c0_i32 = arith.constant 0 : i32
    %c0_i32_0 = arith.constant 0 : i32
    return %1, %c0_i32 : i32, i32
  }
  func.func @transform_2(%arg0: i32, %arg1: i32) -> (i32, i32, i32) {
    %c0_i32 = arith.constant 0 : i32
    %c0_i32_0 = arith.constant 0 : i32
    %c0_i32_1 = arith.constant 0 : i32
    return %arg0, %c0_i32, %c0_i32_0 : i32, i32, i32
  }
}

</mosaic_0001>

<bundles_post_ra>
// kernel: tpu_custom_call.1
= control target key start
LH: loop header
LB: loop body
LE: loop exit
PB: predicated region body
PF: predicated region fallthrough
CT: control target
= control target key end

     0   :  { %7 = vsyncpa [#allocation4], 0  ;;  %s287_s0 = inlined_call_operand.hbm [shape: f32[2,1024], index: 0, kind: input, shape index: {}]   ;;  %s288_s1 = inlined_call_operand.hbm [shape: f32[2,1024], index: 1, kind: input, shape index: {}]   ;;  %s289_s2 = inlined_call_operand.hbm [shape: f32[1,8,128], index: 2, kind: output, shape index: {}]  }
   0x1   :  { %8 = vsyncpa [#allocation7], 0 }
   0x2   :  { %9 = vsyncpa [#allocation5], 0  ;;  %s19_s11 = sshll.u32 %s287_s0, 4  ;;  %s252_s12 = smov [#allocation3]   ;;  %s20_s11 = int_to_ptr.hbm [resolvable:$true] %s19_s11 }
   0x3   :  { %s21_s13 = sshll.u32 %s252_s12, 4  ;;  %s34_s16 = sshll.u32 %s288_s1, 4  ;;  %s22_s13 = int_to_ptr.vmem [resolvable:$true] %s21_s13  ;;  %s35_s16 = int_to_ptr.hbm [resolvable:$true] %s34_s16 }
   0x4   :  { %24 = dma.hbm_to_vmem [thread:$0]  %s20_s11, 256, %s22_s13, [#allocation4]  }
   0x5   :  { %s253_s17 = smov [#allocation6]  }
   0x6   :  { %s36_s18 = sshll.u32 %s253_s17, 4  ;;  %s37_s18 = int_to_ptr.vmem [resolvable:$true] %s36_s18 }
   0x7   :  { %39 = dma.hbm_to_vmem [thread:$0]  %s35_s16, 256, %s37_s18, [#allocation7]  }
   0x8   :  { %246 = dma.done.wait [#allocation4], 256  }
   0x9   :  { %247 = vsyncadd [#allocation4], 4294967040 }
   0xa   :  { %248 = dma.done.wait [#allocation7], 256  }
   0xb   :  { %249 = vsyncadd [#allocation7], 4294967040  ;;  %v56_v0 = vld [vmem:[#allocation3] sm:$0xff]  ;;  %v57_v1 = vld [vmem:[#allocation3 + $0x8] sm:$0xff]  ;;  %vm116_vm0 = vcmask 1041408   ;;  %s254_s0 = smov [#allocation8]  }
   0xc   :  { %v58_v2 = vmax.f32 %v56_v0, 1e-07  ;;  %v59_v3 = vmax.f32 %v57_v1, 1e-07  ;;  %v62_v8 = vld [vmem:[#allocation6] sm:$0xff]  ;;  %v63_v9 = vld [vmem:[#allocation6 + $0x8] sm:$0xff] }
   0xd   :  { %v70_v13 = vsub.f32 1.0, %v62_v8  ;;  %v71_v16 = vsub.f32 1.0, %v63_v9  ;;  %s148_s1 = sshll.u32 %s254_s0, 4  ;;  %s150_s21 = sshll.u32 %s289_s2, 4  ;;  %s149_s1 = int_to_ptr.vmem [resolvable:$true] %s148_s1  ;;  %s151_s21 = int_to_ptr.hbm [resolvable:$true] %s150_s21 }
   0xe   :  { %v60_v4 = vmin.f32 %v58_v2, 0.9999999  ;;  %v61_v5 = vmin.f32 %v59_v3, 0.9999999 }
  0x10   :  { %166 = vlog2.f32 %v60_v4  ;;  %v72_v6 = vsub.f32 1.0, %v60_v4  ;;  %v73_v7 = vsub.f32 1.0, %v61_v5 }
  0x11   :  { %168 = vlog2.f32 %v61_v5 }
  0x12   :  { %170 = vlog2.f32 %v72_v6 }
  0x13   :  { %172 = vlog2.f32 %v73_v7 }
  0x16   :  { %v167_v10 = vpop.eup %166 }
  0x17   :  { %v169_v11 = vpop.eup %168  ;;  %v65_v12 = vmul.f32 0.6931472, %v167_v10 }
  0x18   :  { %v171_v14 = vpop.eup %170  ;;  %v67_v15 = vmul.f32 0.6931472, %v169_v11 }
  0x19   :  { %v173_v17 = vpop.eup %172  ;;  %v68_v18 = vmul.f32 %v65_v12, %v62_v8  ;;  %v75_v19 = vmul.f32 0.6931472, %v171_v14 }
  0x1a   :  { %v69_v20 = vmul.f32 %v67_v15, %v63_v9  ;;  %v77_v21 = vmul.f32 0.6931472, %v173_v17 }
  0x1b   :  { %v78_v22 = vmul.f32 %v75_v19, %v70_v13 }
  0x1c   :  { %v79_v23 = vmul.f32 %v77_v21, %v71_v16 }
  0x1d   :  { %v80_v24 = vadd.f32 %v78_v22, %v68_v18 }
  0x1e   :  { %v81_v25 = vadd.f32 %v79_v23, %v69_v20 }
  0x1f   :  { %v82_v26 = vsub.f32 0.0, %v80_v24 }
  0x20   :  { %v83_v27 = vsub.f32 0.0, %v81_v25 }
  0x21   :  { %97 = vst [vmem:[#allocation1] ss:$4 sm:$0xff] %v82_v26 }
  0x22   :  { %99 = vst [vmem:[#allocation1 + $0x20] ss:$4 sm:$0xff] %v83_v27 }
  0x28   :  { %v100_v28 = vld.sshfl [vmem:[#allocation1] sm:$0xff pattern:$0x73625140]  ;;  %v101_v29 = vld.sshfl [vmem:[#allocation1 + $0x8] sm:$0xff pattern:$0x73625140] }
  0x29   :  { %v102_v30 = vld.sshfl [vmem:[#allocation1 + $0x10] sm:$0xff pattern:$0x73625140]  ;;  %v103_v31 = vld.sshfl [vmem:[#allocation1 + $0x18] sm:$0xff pattern:$0x73625140] }
  0x2a   :  { %v117_v32 = vsel %vm116_vm0, %v100_v28, 0.0  ;;  %v118_v33 = vsel %vm116_vm0, %v101_v29, 0.0  ;;  %v120_v34 = vsel %vm116_vm0, %v102_v30, 0.0  ;;  %v104_v35 = vld.sshfl [vmem:[#allocation1 + $0x20] sm:$0xff pattern:$0x73625140] }
  0x2b   :  { %v119_v36 = vadd.f32 %v118_v33, %v117_v32  ;;  %v122_v37 = vsel %vm116_vm0, %v103_v31, 0.0  ;;  %v105_v38 = vld.sshfl [vmem:[#allocation1 + $0x28] sm:$0xff pattern:$0x73625140]  ;;  %v124_v40 = vsel %vm116_vm0, %v104_v35, 0.0 }
  0x2c   :  { %v106_v41 = vld.sshfl [vmem:[#allocation1 + $0x30] sm:$0xff pattern:$0x73625140]  ;;  %v126_v43 = vsel %vm116_vm0, %v105_v38, 0.0 }
  0x2d   :  { %v121_v39 = vadd.f32 %v120_v34, %v119_v36  ;;  %v107_v44 = vld.sshfl [vmem:[#allocation1 + $0x38] sm:$0xff pattern:$0x73625140]  ;;  %v128_v46 = vsel %vm116_vm0, %v106_v41, 0.0 }
  0x2e   :  { %v130_v48 = vsel %vm116_vm0, %v107_v44, 0.0 }
  0x2f   :  { %v123_v42 = vadd.f32 %v122_v37, %v121_v39 }
  0x31   :  { %v125_v45 = vadd.f32 %v124_v40, %v123_v42 }
  0x33   :  { %v127_v47 = vadd.f32 %v126_v43, %v125_v45 }
  0x35   :  { %v129_v49 = vadd.f32 %v128_v46, %v127_v47 }
  0x37   :  { %v131_v50 = vadd.f32 %v130_v48, %v129_v49 }
  0x39   :  { %132 = vadd.xlane.f32.xlu0 %v131_v50 }
  0xac   :  { %v133_v51 = vpop.xlane.xlu0 %132 }
  0xad   :  { %v134_v52 = vrot.slane %v133_v51, 4 }
  0xaf   :  { %v135_v53 = vadd.f32 %v134_v52, %v133_v51 }
  0xb1   :  { %v136_v54 = vrot.slane %v135_v53, 2 }
  0xb3   :  { %v137_v55 = vadd.f32 %v136_v54, %v135_v53 }
  0xb5   :  { %v138_v56 = vrot.slane %v137_v55, 1 }
  0xb7   :  { %v139_v57 = vadd.f32 %v138_v56, %v137_v55 }
  0xb9   :  { %161 = vpush %v139_v57 }
  0xea   :  { %s162_s22 = spop %161 }
  0xeb   :  { %v141_v58 = vstv %s162_s22 }
  0xec   :  { %142 = vst [vmem:[#allocation8] sm:$0xff] %v141_v58 }
  0xed   :  { %153 = dma.vmem_to_hbm [thread:$0]  %s149_s1, 128, %s151_s21, [#allocation5]  }
  0xee   :  { %250 = dma.done.wait [#allocation5], 128  }
  0xef   :  { %251 = vsyncadd [#allocation5], 4294967168 }
  0xf0   :  { %158 = vsyncpa [#allocation4], 1 }
  0xf1   :  { %159 = vsyncpa [#allocation7], 1 }
  0xf2   :  { %160 = vsyncpa [#allocation5], 1 }

</bundles_post_ra>
